<compile_context>
chip_gen: v7x
topology: tpu7x:2x2x1
jax: 0.10.0
libtpu: 0.0.40
codegen_flags: <defaults>
</compile_context>

<pallas_src>
import jax
import jax.numpy as jnp
from jax.experimental import pallas as pl
from jax.experimental.pallas import tpu as pltpu

# logical (PyTorch) sizes and padded (TPU-friendly) sizes
H1, H2 = 400, 300
H1P, H2P = 512, 384      # multiples of 128
OUTP = 128               # lane-dense output width (only column 0 is the real Q value)


def _round_up(x, m):
    return ((x + m - 1) // m) * m


def _cdiv(a, b):
    return (a + b - 1) // b


# --------------------------------------------------------------------------- #
# Pallas kernel: fused 3-layer MLP forward for one batch tile
# --------------------------------------------------------------------------- #
def critic_kernel(x_ref, w1_ref, b1_ref, w2_ref, b2_ref, w3_ref, b3_ref, o_ref):
    # x_ref : [TB, KP]   (bf16)  concat(state, action), zero-padded to KP
    # w1_ref: [KP, 512]  (bf16)  b1_ref: [1, 512] (f32)
    # w2_ref: [512, 384] (bf16)  b2_ref: [1, 384] (f32)
    # w3_ref: [384, 128] (bf16, col 0 real)  b3_ref: [1, 128] (f32, col 0 real)
    # o_ref : [TB, 128]  (f32)
    h1 = (jnp.dot(x_ref[...], w1_ref[...], preferred_element_type=jnp.float32)
          + b1_ref[...])
    h1 = jnp.maximum(h1, 0.0)                                  # F.relu

    h2 = jnp.dot(h1.astype(w2_ref.dtype), w2_ref[...],
                 preferred_element_type=jnp.float32) + b2_ref[...]
    h2 = jnp.maximum(h2, 0.0)                                  # F.relu

    q = jnp.dot(h2.astype(w3_ref.dtype), w3_ref[...],
                preferred_element_type=jnp.float32) + b3_ref[...]
    o_ref[...] = q.astype(o_ref.dtype)


# --------------------------------------------------------------------------- #
# Batch tiling policy
# --------------------------------------------------------------------------- #
def _choose_batch_tiling(B):
    """Return (TB, b_pad) with TB a multiple of 16 (bf16 sublane packing).

    - padded rows < 256: single grid step with TB == padded batch, so pad waste
      is at most 15 rows (fixes the old round-up-to-256 blow-up).
    - padded rows >= 256: an even number (>= 2) of grid steps so the "parallel"
      batch axis can shard across v7x's two TensorCores, tiles capped at 1024
      rows to amortize per-step overhead without VMEM pressure.
    """
    b16 = _round_up(max(B, 1), 16)
    if b16 < 256:
        return b16, b16
    n_steps = max(2, _cdiv(b16, 1024))
    if n_steps % 2:
        n_steps += 1
    tb = _round_up(_cdiv(b16, n_steps), 16)
    return tb, tb * n_steps


# --------------------------------------------------------------------------- #
# Wrapper: batch padding/tiling + pallas_call plumbing
# --------------------------------------------------------------------------- #
def critic_forward(state, action, padded_params):
    w1, b1, w2, b2, w3, b3 = padded_params
    B = state.shape[0]
    K = state.shape[1] + action.shape[1]
    KP = w1.shape[0]                      # padded (state+action) width

    TB, b_pad = _choose_batch_tiling(B)
    grid = (b_pad // TB,)

    # single fused layer-1 input: concat + zero-pad to (b_pad, KP), bf16 for the MXU.
    x = jnp.concatenate([state, action], axis=1).astype(jnp.bfloat16)
    x = jnp.pad(x, ((0, b_pad - B), (0, KP - K)))

    # x/out tiles move with the grid; weights/biases stay resident in VMEM
    # (constant block index -> fetched once, never re-DMA'd).
    resident = lambda shape: pl.BlockSpec(shape, lambda i: (0, 0))

    out = pl.pallas_call(
        critic_kernel,
        out_shape=jax.ShapeDtypeStruct((b_pad, OUTP), jnp.float32),
        grid_spec=pltpu.PrefetchScalarGridSpec(
            num_scalar_prefetch=0,
            grid=grid,
            in_specs=[
                pl.BlockSpec((TB, KP), lambda i: (i, 0)),   # x tile (pipelined)
                resident((KP, H1P)),                        # w1 (merged state+action)
                resident((1, H1P)),                         # b1
                resident((H1P, H2P)),                       # w2
                resident((1, H2P)),                         # b2
                resident((H2P, OUTP)),                      # w3 (padded cols)
                resident((1, OUTP)),                        # b3 (padded cols)
            ],
            out_specs=pl.BlockSpec((TB, OUTP), lambda i: (i, 0)),
        ),
        compiler_params=pltpu.CompilerParams(
            dimension_semantics=("parallel",),
        ),
    )(x, w1, b1, w2, b2, w3, b3)

    # lane-dense (b_pad, 128) -> real (B, 1). Padded rows produce garbage Q values
    # by construction; they are discarded here — never reduce over `out` before this.
    return out[:B, :1]


# --------------------------------------------------------------------------- #
# Parameter init (PyTorch nn.Linear default: U(-1/sqrt(fan_in), 1/sqrt(fan_in)))
# weights stored transposed vs PyTorch, i.e. [in_features, out_features].
# --------------------------------------------------------------------------- #
def init_critic_params(key, state_dim, action_dim):
    def linear(key, fan_in, fan_out):
        kw, kb = jax.random.split(key)
        bound = 1.0 / jnp.sqrt(float(fan_in))
        w = jax.random.uniform(kw, (fan_in, fan_out), jnp.float32, -bound, bound)
        b = jax.random.uniform(kb, (1, fan_out), jnp.float32, -bound, bound)
        return w, b

    k1, k2, k3 = jax.random.split(key, 3)
    w1, b1 = linear(k1, state_dim + action_dim, H1)
    w2, b2 = linear(k2, H1, H2)
    w3, b3 = linear(k3, H2, 1)
    return (w1, b1, w2, b2, w3, b3)


def prepare_padded_params(params):
    """Zero-pad feature dims to TPU-friendly sizes and cast weights to bf16
    (biases stay f32). Done once, outside the hot path. Padded columns stay
    exactly 0 through bias+ReLU, so results match the unpadded math."""
    w1, b1, w2, b2, w3, b3 = params
    K = w1.shape[0]                      # state_dim + action_dim
    KP = _round_up(K, 32)                # small pad keeps layer-1 weight DMA minimal
    w1p = jnp.pad(w1, ((0, KP - K), (0, H1P - H1))).astype(jnp.bfloat16)
    b1p = jnp.pad(b1, ((0, 0), (0, H1P - H1)))
    w2p = jnp.pad(w2, ((0, H1P - H1), (0, H2P - H2))).astype(jnp.bfloat16)
    b2p = jnp.pad(b2, ((0, 0), (0, H2P - H2)))
    w3p = jnp.pad(w3, ((0, H2P - H2), (0, OUTP - 1))).astype(jnp.bfloat16)
    b3p = jnp.pad(b3, ((0, 0), (0, OUTP - 1)))
    return (w1p, b1p, w2p, b2p, w3p, b3p)


# --------------------------------------------------------------------------- #
# Pure-JAX reference following the same bf16(MXU)/f32(accumulate) recipe
# --------------------------------------------------------------------------- #
def critic_ref(state, action, params):
    w1, b1, w2, b2, w3, b3 = params
    x = jnp.concatenate([state, action], axis=1).astype(jnp.bfloat16)
    h1 = jnp.maximum(
        jnp.dot(x, w1.astype(jnp.bfloat16), preferred_element_type=jnp.float32) + b1, 0.0)
    h2 = jnp.maximum(
        jnp.dot(h1.astype(jnp.bfloat16), w2.astype(jnp.bfloat16),
                preferred_element_type=jnp.float32) + b2, 0.0)
    return jnp.dot(h2.astype(jnp.bfloat16), w3.astype(jnp.bfloat16),
                   preferred_element_type=jnp.float32) + b3


if __name__ == "__main__":
    batch = 2
    state_dim = 16
    action_dim = 8

    key = jax.random.PRNGKey(0)
    k_state, k_action, k_params = jax.random.split(key, 3)

    state = jax.random.normal(k_state, (batch, state_dim), jnp.float32)
    action = jax.random.normal(k_action, (batch, action_dim), jnp.float32)

    params = init_critic_params(k_params, state_dim, action_dim)
    padded_params = prepare_padded_params(params)

    q = critic_forward(state, action, padded_params)
    q = jax.block_until_ready(q)

    q_ref = critic_ref(state, action, params)
    assert q.shape == (batch, 1)
    assert jnp.allclose(q, q_ref, atol=2e-3, rtol=2e-3)

    print("KERNEL_OK")
</pallas_src>

<mosaic_0001>
module attributes {stable_mosaic.version = 11 : i64} {
  func.func @critic_kernel(%arg0: i32, %arg1: memref<16x32xbf16, #tpu.memory_space<vmem>>, %arg2: memref<32x512xbf16, #tpu.memory_space<vmem>>, %arg3: memref<1x512xf32, #tpu.memory_space<vmem>>, %arg4: memref<512x384xbf16, #tpu.memory_space<vmem>>, %arg5: memref<1x384xf32, #tpu.memory_space<vmem>>, %arg6: memref<384x128xbf16, #tpu.memory_space<vmem>>, %arg7: memref<1x128xf32, #tpu.memory_space<vmem>>, %arg8: memref<16x128xf32, #tpu.memory_space<vmem>>) attributes {dimension_semantics = [#tpu.dimension_semantics<parallel>], iteration_bounds = array<i64: 1>, scalar_prefetch = 0 : i64, scratch_operands = 0 : i64, tpu.core_type = #tpu.core_type<tc>, window_params = [{transform_indices = @transform_0, window_bounds = array<i64: 16, 32>}, {pipeline_mode = #tpu.pipeline_mode<synchronous>, transform_indices = @transform_1, window_bounds = array<i64: 32, 512>}, {pipeline_mode = #tpu.pipeline_mode<synchronous>, transform_indices = @transform_2, window_bounds = array<i64: 1, 512>}, {pipeline_mode = #tpu.pipeline_mode<synchronous>, transform_indices = @transform_3, window_bounds = array<i64: 512, 384>}, {pipeline_mode = #tpu.pipeline_mode<synchronous>, transform_indices = @transform_4, window_bounds = array<i64: 1, 384>}, {pipeline_mode = #tpu.pipeline_mode<synchronous>, transform_indices = @transform_5, window_bounds = array<i64: 384, 128>}, {pipeline_mode = #tpu.pipeline_mode<synchronous>, transform_indices = @transform_6, window_bounds = array<i64: 1, 128>}, {transform_indices = @transform_7, window_bounds = array<i64: 16, 128>}]} {
    %c0 = arith.constant 0 : index
    %c0_0 = arith.constant 0 : index
    %0 = vector.load %arg1[%c0, %c0_0] : memref<16x32xbf16, #tpu.memory_space<vmem>>, vector<16x32xbf16>
    %c0_1 = arith.constant 0 : index
    %c0_2 = arith.constant 0 : index
    %1 = vector.load %arg2[%c0_1, %c0_2] : memref<32x512xbf16, #tpu.memory_space<vmem>>, vector<32x512xbf16>
    %cst = arith.constant dense<0.000000e+00> : vector<16x512xf32>
    %2 = tpu.matmul %0, %1, %cst {dimension_numbers = #tpu.dot_dimension_numbers<[1], [0], [0], [1], [0, 0, 1, 1], [], []>} : vector<16x32xbf16>, vector<32x512xbf16>, vector<16x512xf32> -> vector<16x512xf32>
    %c0_3 = arith.constant 0 : index
    %c0_4 = arith.constant 0 : index
    %3 = vector.load %arg3[%c0_3, %c0_4] : memref<1x512xf32, #tpu.memory_space<vmem>>, vector<1x512xf32>
    %4 = vector.broadcast %3 : vector<1x512xf32> to vector<16x512xf32>
    %5 = arith.addf %2, %4 : vector<16x512xf32>
    %cst_5 = arith.constant 0.000000e+00 : f32
    %6 = vector.broadcast %cst_5 : f32 to vector<16x512xf32>
    %7 = arith.maximumf %5, %6 : vector<16x512xf32>
    %8 = arith.truncf %7 : vector<16x512xf32> to vector<16x512xbf16>
    %c0_6 = arith.constant 0 : index
    %c0_7 = arith.constant 0 : index
    %9 = vector.load %arg4[%c0_6, %c0_7] : memref<512x384xbf16, #tpu.memory_space<vmem>>, vector<512x384xbf16>
    %cst_8 = arith.constant dense<0.000000e+00> : vector<16x384xf32>
    %10 = tpu.matmul %8, %9, %cst_8 {dimension_numbers = #tpu.dot_dimension_numbers<[1], [0], [0], [1], [0, 0, 1, 1], [], []>} : vector<16x512xbf16>, vector<512x384xbf16>, vector<16x384xf32> -> vector<16x384xf32>
    %c0_9 = arith.constant 0 : index
    %c0_10 = arith.constant 0 : index
    %11 = vector.load %arg5[%c0_9, %c0_10] : memref<1x384xf32, #tpu.memory_space<vmem>>, vector<1x384xf32>
    %12 = vector.broadcast %11 : vector<1x384xf32> to vector<16x384xf32>
    %13 = arith.addf %10, %12 : vector<16x384xf32>
    %cst_11 = arith.constant 0.000000e+00 : f32
    %14 = vector.broadcast %cst_11 : f32 to vector<16x384xf32>
    %15 = arith.maximumf %13, %14 : vector<16x384xf32>
    %16 = arith.truncf %15 : vector<16x384xf32> to vector<16x384xbf16>
    %c0_12 = arith.constant 0 : index
    %c0_13 = arith.constant 0 : index
    %17 = vector.load %arg6[%c0_12, %c0_13] : memref<384x128xbf16, #tpu.memory_space<vmem>>, vector<384x128xbf16>
    %cst_14 = arith.constant dense<0.000000e+00> : vector<16x128xf32>
    %18 = tpu.matmul %16, %17, %cst_14 {dimension_numbers = #tpu.dot_dimension_numbers<[1], [0], [0], [1], [0, 0, 1, 1], [], []>} : vector<16x384xbf16>, vector<384x128xbf16>, vector<16x128xf32> -> vector<16x128xf32>
    %c0_15 = arith.constant 0 : index
    %c0_16 = arith.constant 0 : index
    %19 = vector.load %arg7[%c0_15, %c0_16] : memref<1x128xf32, #tpu.memory_space<vmem>>, vector<1x128xf32>
    %20 = vector.broadcast %19 : vector<1x128xf32> to vector<16x128xf32>
    %21 = arith.addf %18, %20 : vector<16x128xf32>
    %c0_17 = arith.constant 0 : index
    %c0_18 = arith.constant 0 : index
    %22 = vector.load %arg8[%c0_17, %c0_18] : memref<16x128xf32, #tpu.memory_space<vmem>>, vector<16x128xf32>
    tpu.vector_store %arg8[%c0_17, %c0_18], %21 {strides = array<i32>} : memref<16x128xf32, #tpu.memory_space<vmem>>, vector<16x128xf32>,
    return
  }
  func.func @transform_0(%arg0: i32) -> (i32, i32) {
    %c0_i32 = arith.constant 0 : i32
    %c0_i32_0 = arith.constant 0 : i32
    return %arg0, %c0_i32 : i32, i32
  }
  func.func @transform_1(%arg0: i32) -> (i32, i32) {
    %c0_i32 = arith.constant 0 : i32
    %c0_i32_0 = arith.constant 0 : i32
    %c0_i32_1 = arith.constant 0 : i32
    return %c0_i32, %c0_i32_0 : i32, i32
  }
  func.func @transform_2(%arg0: i32) -> (i32, i32) {
    %c0_i32 = arith.constant 0 : i32
    %c0_i32_0 = arith.constant 0 : i32
    %c0_i32_1 = arith.constant 0 : i32
    return %c0_i32, %c0_i32_0 : i32, i32
  }
  func.func @transform_3(%arg0: i32) -> (i32, i32) {
    %c0_i32 = arith.constant 0 : i32
    %c0_i32_0 = arith.constant 0 : i32
    %c0_i32_1 = arith.constant 0 : i32
    return %c0_i32, %c0_i32_0 : i32, i32
  }
  func.func @transform_4(%arg0: i32) -> (i32, i32) {
    %c0_i32 = arith.constant 0 : i32
    %c0_i32_0 = arith.constant 0 : i32
    %c0_i32_1 = arith.constant 0 : i32
    return %c0_i32, %c0_i32_0 : i32, i32
  }
  func.func @transform_5(%arg0: i32) -> (i32, i32) {
    %c0_i32 = arith.constant 0 : i32
    %c0_i32_0 = arith.constant 0 : i32
    %c0_i32_1 = arith.constant 0 : i32
    return %c0_i32, %c0_i32_0 : i32, i32
  }
  func.func @transform_6(%arg0: i32) -> (i32, i32) {
    %c0_i32 = arith.constant 0 : i32
    %c0_i32_0 = arith.constant 0 : i32
    %c0_i32_1 = arith.constant 0 : i32
    return %c0_i32, %c0_i32_0 : i32, i32
  }
  func.func @transform_7(%arg0: i32) -> (i32, i32) {
    %c0_i32 = arith.constant 0 : i32
    %c0_i32_0 = arith.constant 0 : i32
    return %arg0, %c0_i32 : i32, i32
  }
}

</mosaic_0001>

<bundles_post_ra>
// kernel: tpu_custom_call.1
= control target key start
LH: loop header
LB: loop body
LE: loop exit
PB: predicated region body
PF: predicated region fallthrough
CT: control target
= control target key end

     0   :  { %12 = vsyncpa [#allocation3], 0  ;;  %s2094_s0 = inlined_call_operand.hbm [shape: bf16[16,32], index: 0, kind: input, shape index: {}]   ;;  %s2095_s1 = inlined_call_operand.hbm [shape: bf16[32,512], index: 1, kind: input, shape index: {}]   ;;  %s2096_s2 = inlined_call_operand.vmem [shape: f32[1,512], index: 2, kind: input, shape index: {}]   ;;  %s2097_s3 = inlined_call_operand.hbm [shape: bf16[512,384], index: 3, kind: input, shape index: {}]   ;;  %s2098_s4 = inlined_call_operand.vmem [shape: f32[1,384], index: 4, kind: input, shape index: {}]   ;;  %s2099_s5 = inlined_call_operand.hbm [shape: bf16[384,128], index: 5, kind: input, shape index: {}]   ;;  %s2100_s6 = inlined_call_operand.vmem [shape: f32[1,128], index: 6, kind: input, shape index: {}]   ;;  %s2101_s7 = inlined_call_operand.hbm [shape: f32[16,128], index: 7, kind: output, shape index: {}]  }
   0x1   :  { %13 = vsyncpa [#allocation6], 0 }
   0x2   :  { %14 = vsyncpa [#allocation9], 0 }
   0x3   :  { %15 = vsyncpa [#allocation4], 0  ;;  %s1932_s24 = smov [#allocation5]   ;;  %s1814_s28 = scalar_lea.hbm %s2095_s1, 1024 }
   0x4   :  { %s33_s25 = sshll.u32 %s1932_s24, 4  ;;  %p1815_p0 = scmp.ne.s32.totalorder %s2095_s1, %s1814_s28  ;;  %s34_s25 = int_to_ptr.vmem [resolvable:$true] %s33_s25 }
   0x5   :  { %p1818_p1 = scmp.lt.u32.totalorder %s1814_s28, %s2095_s1 }
   0x7   :  { %p1820_p2 = pnand %p1818_p1, %p1815_p0 }
   0x9   :  { %1823 = shalt.err (!%p1820_p2)
}
   0xa   :  { %s1824_s10 = scalar_lea.vmem %s34_s25, 1024  ;;  %p1829_p4 = scmp.lt.s32.totalorder %s34_s25, %s34_s25 }
   0xb   :  { %p1825_p3 = scmp.ne.s32.totalorder %s34_s25, %s1824_s10  ;;  %p1830_p5 = scmp.lt.s32.totalorder %s1824_s10, %s1824_s10 }
   0xd   :  { %p1831_p6 = por %p1830_p5, %p1829_p4 }
   0xf   :  { %p1832_p7 = pnand %p1831_p6, %p1825_p3 }
  0x11   :  { %1835 = shalt.err (!%p1832_p7)
}
  0x12   :  { %s1933_s11 = smov 256   ;;  %s1934_s12 = smov 16  }
  0x13   :  { %39 = dma.hbm_to_vmem [thread:$0]  %s2095_s1, 1024, %s34_s25, [#allocation6], %s1933_s11, %s1933_s11, %s1934_s12  }
  0x14   :  { %s1935_s15 = smov [#allocation2]   ;;  %s1836_s19 = scalar_lea.hbm %s2094_s0, 128 }
  0x15   :  { %s21_s16 = sshll.u32 %s1935_s15, 4  ;;  %p1837_p8 = scmp.ne.s32.totalorder %s2094_s0, %s1836_s19  ;;  %s22_s16 = int_to_ptr.vmem [resolvable:$true] %s21_s16 }
  0x16   :  { %p1840_p9 = scmp.lt.u32.totalorder %s1836_s19, %s2094_s0 }
  0x18   :  { %p1842_p10 = pnand %p1840_p9, %p1837_p8 }
  0x1a   :  { %1845 = shalt.err (!%p1842_p10)
}
  0x1b   :  { %s1846_s24 = scalar_lea.vmem %s22_s16, 128  ;;  %p1851_p12 = scmp.lt.s32.totalorder %s22_s16, %s22_s16 }
  0x1c   :  { %p1847_p11 = scmp.ne.s32.totalorder %s22_s16, %s1846_s24  ;;  %p1852_p13 = scmp.lt.s32.totalorder %s1846_s24, %s1846_s24 }
  0x1e   :  { %p1853_p0 = por %p1852_p13, %p1851_p12 }
  0x20   :  { %p1854_p1 = pnand %p1853_p0, %p1847_p11 }
  0x22   :  { %1857 = shalt.err (!%p1854_p1)
}
  0x23   :  { %s1936_s1 = smov 64   ;;  %s1937_s25 = smov 4  }
  0x24   :  { %27 = dma.hbm_to_vmem [thread:$0]  %s2094_s0, 128, %s22_s16, [#allocation3], %s1936_s1, %s1936_s1, %s1937_s25  }
  0x25   :  { %s1938_s28 = smov [#allocation7]   ;;  %s1858_s9 = scalar_lea.hbm %s2097_s3, 12288 }
  0x26   :  { %s47_s29 = sshll.u32 %s1938_s28, 4  ;;  %p1859_p2 = scmp.ne.s32.totalorder %s2097_s3, %s1858_s9  ;;  %s48_s29 = int_to_ptr.vmem [resolvable:$true] %s47_s29 }
  0x27   :  { %p1862_p3 = scmp.lt.u32.totalorder %s1858_s9, %s2097_s3 }
  0x29   :  { %p1864_p4 = pnand %p1862_p3, %p1859_p2 }
  0x2b   :  { %1867 = shalt.err (!%p1864_p4)
}
  0x2c   :  { %s1868_s14 = scalar_lea.vmem %s48_s29, 12288  ;;  %p1873_p6 = scmp.lt.s32.totalorder %s48_s29, %s48_s29 }
  0x2d   :  { %p1869_p5 = scmp.ne.s32.totalorder %s48_s29, %s1868_s14  ;;  %p1874_p7 = scmp.lt.s32.totalorder %s1868_s14, %s1868_s14 }
  0x2f   :  { %p1875_p8 = por %p1874_p7, %p1873_p6 }
  0x31   :  { %p1876_p9 = pnand %p1875_p8, %p1869_p5 }
  0x33   :  { %1879 = shalt.err (!%p1876_p9)
}
  0x34   :  { %s1939_s0 = smov 192   ;;  %s1940_s15 = smov 12  }
  0x35   :  { %53 = dma.hbm_to_vmem [thread:$0]  %s2097_s3, 12288, %s48_s29, [#allocation6], %s1939_s0, %s1939_s0, %s1940_s15  }
  0x36   :  { %s1941_s18 = smov [#allocation8]   ;;  %s1880_s22 = scalar_lea.hbm %s2099_s5, 3072 }
  0x37   :  { %s61_s19 = sshll.u32 %s1941_s18, 4  ;;  %p1881_p10 = scmp.ne.s32.totalorder %s2099_s5, %s1880_s22  ;;  %s62_s19 = int_to_ptr.vmem [resolvable:$true] %s61_s19 }
  0x38   :  { %p1884_p11 = scmp.lt.u32.totalorder %s1880_s22, %s2099_s5 }
  0x3a   :  { %p1886_p12 = pnand %p1884_p11, %p1881_p10 }
  0x3c   :  { %1889 = shalt.err (!%p1886_p12)
}
  0x3d   :  { %s1890_s28 = scalar_lea.vmem %s62_s19, 3072  ;;  %p1895_p0 = scmp.lt.s32.totalorder %s62_s19, %s62_s19 }
  0x3e   :  { %p1891_p13 = scmp.ne.s32.totalorder %s62_s19, %s1890_s28  ;;  %p1896_p1 = scmp.lt.s32.totalorder %s1890_s28, %s1890_s28 }
  0x40   :  { %p1897_p2 = por %p1896_p1, %p1895_p0 }
  0x42   :  { %p1898_p3 = pnand %p1897_p2, %p1891_p13 }
  0x44   :  { %1901 = shalt.err (!%p1898_p3)
}
  0x45   :  { %67 = dma.hbm_to_vmem [thread:$0]  %s2099_s5, 3072, %s62_s19, [#allocation9], %s1936_s1, %s1936_s1, %s1937_s25  }
  0x46   :  { %1924 = dma.done.wait [#allocation3], 128  }
  0x47   :  { %1925 = vsyncadd [#allocation3], 4294967168 }
  0x48   :  { %1926 = dma.done.wait [#allocation6], 13312  }
  0x49   :  { %1927 = vsyncadd [#allocation6], 4294953984 }
  0x4a   :  { %1928 = dma.done.wait [#allocation9], 3072  }
  0x4b   :  { %1929 = vsyncadd [#allocation9], 4294964224  ;;  %v1942_v0 = vmov 0   ;;  %v1649_v1 = vld [vmem:[#allocation5 + $0x4] ss:$16 sps:$4 sm:$0xff]   ;;  %v1655_v5 = vld [vmem:[#allocation2] sm:$0xff]   ;;  %v95_v60 = vlaneseq }
  0x4c   :  { %196 = vmatprep.mubr.bf16.mxu0 %v1942_v0  ;;  %239 = vmatprep.mubr.bf16.mxu1 %v1942_v0  ;;  %v1651_v2 = vld [vmem:[#allocation5] ss:$16 sps:$4 sm:$0xff]   ;;  %v1652_v3 = vld [vmem:[#allocation5 + $0x24] ss:$16 sps:$4 sm:$0xff]   ;;  %v1656_v6 = vld [vmem:[#allocation5 + $0xc] ss:$16 sps:$4 sm:$0xff]  }
  0x4d   :  { %164 = vmatprep.subr.bf16.mxu0 %v1649_v1  ;;  %v1654_v4 = vld [vmem:[#allocation5 + $0x20] ss:$16 sps:$4 sm:$0xff]   ;;  %v1658_v7 = vld [vmem:[#allocation5 + $0x8] ss:$16 sps:$4 sm:$0xff]   ;;  %v1659_v8 = vld [vmem:[#allocation5 + $0x2c] ss:$16 sps:$4 sm:$0xff]   ;;  %207 = vmatprep.subr.bf16.mxu1 %v1656_v6 }
  0x4e   :  { %165 = vmatpush1.bf16.msra.mxu0 %v1651_v2  ;;  %v1661_v9 = vld [vmem:[#allocation5 + $0x28] ss:$16 sps:$4 sm:$0xff]   ;;  %vm160_vm0 = vcmask 261120   ;;  %208 = vmatpush1.bf16.msra.mxu1 %v1658_v7  ;;  %v1662_v10 = vld [vmem:[#allocation7] ss:$12 sps:$4 sm:$0xff]   ;;  %v2042_v61 = vshrl.u32 %v95_v60, 7 }
  0x4f   :  { %166 = vmatprep.subr.bf16.mxu0 %v1652_v3  ;;  %v1664_v11 = vld [vmem:[#allocation7 + $0x4] ss:$12 sps:$4 sm:$0xff]   ;;  %209 = vmatprep.subr.bf16.mxu1 %v1659_v8  ;;  %v1667_v12 = vld [vmem:[#allocation7 + $0x1c] ss:$12 sps:$4 sm:$0xff]   ;;  %v1670_v14 = vld [vmem:[#allocation7 + $0x34] ss:$12 sps:$4 sm:$0xff]  }
  0x50   :  { %v1665_v13 = vld [vmem:[#allocation7 + $0x18] ss:$12 sps:$4 sm:$0xff]   ;;  %v1668_v15 = vld [vmem:[#allocation7 + $0x30] ss:$12 sps:$4 sm:$0xff]   ;;  %v1671_v17 = vld [vmem:[#allocation7 + $0x48] ss:$12 sps:$4 sm:$0xff]  }
  0x51   :  { %v1673_v16 = vld [vmem:[#allocation7 + $0x4c] ss:$12 sps:$4 sm:$0xff]   ;;  %v1676_v18 = vld [vmem:[#allocation7 + $0x64] ss:$12 sps:$4 sm:$0xff]   ;;  %v1689_v19 = vld [vmem:[#allocation7 + $0xc8] ss:$12 sps:$4 sm:$0xff]  }
  0x52   :  { %167 = vmatpush1.bf16.msra.mxu0 %v1654_v4  ;;  %210 = vmatpush1.bf16.msra.mxu1 %v1661_v9  ;;  %v1690_v20 = vld [vmem:[#allocation7 + $0x8] ss:$12 sps:$4 sm:$0xff]   ;;  %v1674_v21 = vld [vmem:[#allocation7 + $0x60] ss:$12 sps:$4 sm:$0xff]   ;;  %v1699_v25 = vld [vmem:[#allocation7 + $0xf8] ss:$12 sps:$4 sm:$0xff]  }
  0x53   :  { %919 = vmatprep.subr.bf16.mxu0 %v1664_v11  ;;  %1530 = vmatprep.subr.bf16.mxu1 %v1689_v19  ;;  %v1694_v22 = vld [vmem:[#allocation7 + $0xe0] ss:$12 sps:$4 sm:$0xff]   ;;  %v1679_v24 = vld [vmem:[#allocation7 + $0x7c] ss:$12 sps:$4 sm:$0xff]   ;;  %v1700_v26 = vld [vmem:[#allocation7 + $0x38] ss:$12 sps:$4 sm:$0xff]  }
  0x54   :  { %v1695_v23 = vld [vmem:[#allocation7 + $0x20] ss:$12 sps:$4 sm:$0xff]   ;;  %v1677_v27 = vld [vmem:[#allocation7 + $0x78] ss:$12 sps:$4 sm:$0xff]   ;;  %v1704_v29 = vld [vmem:[#allocation7 + $0x110] ss:$12 sps:$4 sm:$0xff]  }
  0x55   :  { %1407 = vmatmul.mubr.msk.bf16.vlgmr.msra.gmra.mrb[0].mxu0 %vm160_vm0, %v1655_v5  ;;  %1408 = vmatmul.mubr.msk.bf16.vlgmr.msra.gmra.mrb[0].mxu1 %vm160_vm0, %v1655_v5  ;;  %v1682_v28 = vld [vmem:[#allocation7 + $0x94] ss:$12 sps:$4 sm:$0xff]   ;;  %v1705_v30 = vld [vmem:[#allocation7 + $0x50] ss:$12 sps:$4 sm:$0xff]   ;;  %v1685_v32 = vld [vmem:[#allocation7 + $0xac] ss:$12 sps:$4 sm:$0xff]  }
  0x56   :  { %920 = vmatpush1.bf16.msra.mxu0 %v1662_v10  ;;  %1531 = vmatpush3.bf16.msra.mxu1 %v1690_v20  ;;  %v1680_v31 = vld [vmem:[#allocation7 + $0x90] ss:$12 sps:$4 sm:$0xff]   ;;  %v1709_v33 = vld [vmem:[#allocation7 + $0x128] ss:$12 sps:$4 sm:$0xff]   ;;  %v1714_v36 = vld [vmem:[#allocation7 + $0x140] ss:$12 sps:$4 sm:$0xff]  }
  0x57   :  { %921 = vmatprep.subr.bf16.mxu0 %v1667_v12  ;;  %1532 = vmatprep.subr.bf16.mxu1 %v1694_v22  ;;  %v1683_v34 = vld [vmem:[#allocation7 + $0xa8] ss:$12 sps:$4 sm:$0xff]   ;;  %v1688_v37 = vld [vmem:[#allocation7 + $0xc4] ss:$12 sps:$4 sm:$0xff]   ;;  %v1686_v38 = vld [vmem:[#allocation7 + $0xc0] ss:$12 sps:$4 sm:$0xff]  }
  0x58   :  { %v1710_v35 = vld [vmem:[#allocation7 + $0x68] ss:$12 sps:$4 sm:$0xff]   ;;  %v1715_v39 = vld [vmem:[#allocation7 + $0x80] ss:$12 sps:$4 sm:$0xff]   ;;  %v1691_v41 = vld [vmem:[#allocation7 + $0xd8] ss:$12 sps:$4 sm:$0xff]  }
  0x59   :  { %v1693_v40 = vld [vmem:[#allocation7 + $0xdc] ss:$12 sps:$4 sm:$0xff]   ;;  %v1698_v42 = vld [vmem:[#allocation7 + $0xf4] ss:$12 sps:$4 sm:$0xff]   ;;  %v1703_v44 = vld [vmem:[#allocation7 + $0x10c] ss:$12 sps:$4 sm:$0xff]  }
  0x5a   :  { %922 = vmatpush1.bf16.msra.mxu0 %v1665_v13  ;;  %1533 = vmatpush3.bf16.msra.mxu1 %v1695_v23  ;;  %v1696_v43 = vld [vmem:[#allocation7 + $0xf0] ss:$12 sps:$4 sm:$0xff]   ;;  %v1701_v45 = vld [vmem:[#allocation7 + $0x108] ss:$12 sps:$4 sm:$0xff]   ;;  %v1706_v47 = vld [vmem:[#allocation7 + $0x120] ss:$12 sps:$4 sm:$0xff]  }
  0x5b   :  { %923 = vmatprep.subr.bf16.mxu0 %v1670_v14  ;;  %1534 = vmatprep.subr.bf16.mxu1 %v1699_v25  ;;  %v1708_v46 = vld [vmem:[#allocation7 + $0x124] ss:$12 sps:$4 sm:$0xff]   ;;  %v1713_v48 = vld [vmem:[#allocation7 + $0x13c] ss:$12 sps:$4 sm:$0xff]   ;;  %v1718_v50 = vld [vmem:[#allocation7 + $0x154] ss:$12 sps:$4 sm:$0xff]  }
  0x5c   :  { %v1711_v49 = vld [vmem:[#allocation7 + $0x138] ss:$12 sps:$4 sm:$0xff]   ;;  %v1716_v52 = vld [vmem:[#allocation7 + $0x150] ss:$12 sps:$4 sm:$0xff]   ;;  %v1721_v56 = vld [vmem:[#allocation7 + $0x168] ss:$12 sps:$4 sm:$0xff]  }
  0x5d   :  { %v1719_v51 = vld [vmem:[#allocation7 + $0x158] ss:$12 sps:$4 sm:$0xff]   ;;  %v1724_v55 = vld [vmem:[#allocation7 + $0x170] ss:$12 sps:$4 sm:$0xff]   ;;  %v1729_v59 = vld [vmem:[#allocation7 + $0x248] ss:$12 sps:$4 sm:$0xff]  }
  0x5e   :  { %924 = vmatpush1.bf16.msra.mxu0 %v1668_v15  ;;  %1535 = vmatpush3.bf16.msra.mxu1 %v1700_v26  ;;  %v1720_v53 = vld [vmem:[#allocation7 + $0x98] ss:$12 sps:$4 sm:$0xff]   ;;  %v1725_v57 = vld [vmem:[#allocation7 + $0xb0] ss:$12 sps:$4 sm:$0xff]   ;;  %v97_v62 = vsub.s32 0, %v2042_v61  ;;  %v101_v0 = vsub.s32 1, %v2042_v61 }
  0x5f   :  { %925 = vmatprep.subr.bf16.mxu0 %v1673_v16  ;;  %1536 = vmatprep.subr.bf16.mxu1 %v1704_v29  ;;  %v1723_v54 = vld [vmem:[#allocation7 + $0x16c] ss:$12 sps:$4 sm:$0xff]   ;;  %v1728_v58 = vld [vmem:[#allocation7 + $0x184] ss:$12 sps:$4 sm:$0xff]   ;;  %v105_v2 = vsub.s32 2, %v2042_v61  ;;  %v109_v4 = vsub.s32 3, %v2042_v61 }
  0x60   :  { %v93_v63 = vld [vmem:[%s2096_s2] sm:$0xf]  ;;  %v1726_v29 = vld [vmem:[#allocation7 + $0x180] ss:$12 sps:$4 sm:$0xff]   ;;  %vm1944_vm1 = vmmov 0   ;;  %s1945_s8 = smov [#allocation10]  }
  0x61   :  { %v98_v1 = vrot.slane %v93_v63, %v97_v62  ;;  %v102_v3 = vrot.slane %v93_v63, %v101_v0  ;;  %v106_v8 = vrot.slane %v93_v63, %v105_v2  ;;  %v110_v11 = vrot.slane %v93_v63, %v109_v4  ;;  %v1760_v60 = vld [vmem:[#allocation7 + $0x218] ss:$12 sps:$4 sm:$0xff]   ;;  %v1765_v4 = vld [vmem:[#allocation7 + $0x230] ss:$12 sps:$4 sm:$0xff]   ;;  %v1807_v61 = vld [vmem:[#allocation8 + $0x88] sm:$0xff]   ;;  %s1384_s9 = sshll.u32 %s1945_s8, 4  ;;  %s1385_s9 = int_to_ptr.vmem [resolvable:$true] %s1384_s9 }
  0x62   :  { %926 = vmatpush1.bf16.msra.mxu0 %v1671_v17  ;;  %1537 = vmatpush3.bf16.msra.mxu1 %v1705_v30  ;;  %v1730_v30 = vld [vmem:[#allocation7 + $0x188] ss:$12 sps:$4 sm:$0xff]   ;;  %v1763_v63 = vld [vmem:[#allocation7 + $0x22c] ss:$12 sps:$4 sm:$0xff]   ;;  %s1902_s10 = scalar_lea.vmem %s1385_s9, 256  ;;  %p1907_p5 = scmp.lt.s32.totalorder %s1385_s9, %s1385_s9 }
  0x63   :  { %927 = vmatprep.subr.bf16.mxu0 %v1676_v18  ;;  %1538 = vmatprep.subr.bf16.mxu1 %v1709_v33  ;;  %v1733_v33 = vld [vmem:[#allocation7 + $0x19c] ss:$12 sps:$4 sm:$0xff]   ;;  %p1903_p4 = scmp.ne.s32.totalorder %s1385_s9, %s1902_s10  ;;  %p1908_p6 = scmp.lt.s32.totalorder %s1902_s10, %s1902_s10 }
  0x65   :  { %p1909_p7 = por %p1908_p6, %p1907_p5 }
  0x66   :  { %928 = vmatpush1.bf16.msra.mxu0 %v1674_v21  ;;  %1539 = vmatpush3.bf16.msra.mxu1 %v1710_v35 }
  0x67   :  { %929 = vmatprep.subr.bf16.mxu0 %v1679_v24  ;;  %1540 = vmatprep.subr.bf16.mxu1 %v1714_v36  ;;  %p1910_p8 = pnand %p1909_p7, %p1903_p4 }
  0x6a   :  { %930 = vmatpush1.bf16.msra.mxu0 %v1677_v27  ;;  %1541 = vmatpush3.bf16.msra.mxu1 %v1715_v39  ;;  %v1735_v39 = vld [vmem:[#allocation7 + $0x1a0] ss:$12 sps:$4 sm:$0xff]  }
  0x6b   :  { %931 = vmatprep.subr.bf16.mxu0 %v1682_v28  ;;  %1542 = vmatprep.subr.bf16.mxu1 %v1719_v51  ;;  %v1746_v51 = vld [vmem:[#allocation7 + $0x1e0] ss:$12 sps:$4 sm:$0xff]  }
  0x6e   :  { %932 = vmatpush1.bf16.msra.mxu0 %v1680_v31  ;;  %1543 = vmatpush3.bf16.msra.mxu1 %v1720_v53  ;;  %v1753_v53 = vld [vmem:[#allocation7 + $0x1fc] ss:$12 sps:$4 sm:$0xff]  }
  0x6f   :  { %933 = vmatprep.subr.bf16.mxu0 %v1685_v32  ;;  %1544 = vmatprep.subr.bf16.mxu1 %v1724_v55  ;;  %v1751_v55 = vld [vmem:[#allocation7 + $0x1f8] ss:$12 sps:$4 sm:$0xff]  }
  0x72   :  { %934 = vmatpush1.bf16.msra.mxu0 %v1683_v34  ;;  %1545 = vmatpush3.bf16.msra.mxu1 %v1725_v57  ;;  %v1734_v34 = vld [vmem:[#allocation7 + $0x260] ss:$12 sps:$4 sm:$0xff]  }
  0x73   :  { %935 = vmatprep.subr.bf16.mxu0 %v1688_v37  ;;  %1552 = vmatprep.subr.bf16.mxu1 %v1729_v59  ;;  %v1758_v57 = vld [vmem:[#allocation7 + $0x214] ss:$12 sps:$4 sm:$0xff]   ;;  %v1756_v59 = vld [vmem:[#allocation7 + $0x210] ss:$12 sps:$4 sm:$0xff]  }
  0x76   :  { %936 = vmatpush1.bf16.msra.mxu0 %v1686_v38  ;;  %v1731_v38 = vld [vmem:[#allocation7 + $0x198] ss:$12 sps:$4 sm:$0xff]  }
  0x77   :  { %937 = vmatprep.subr.bf16.mxu0 %v1693_v40 }
  0x7a   :  { %938 = vmatpush1.bf16.msra.mxu0 %v1691_v41  ;;  %v1738_v41 = vld [vmem:[#allocation7 + $0x1b4] ss:$12 sps:$4 sm:$0xff]  }
  0x7b   :  { %939 = vmatprep.subr.bf16.mxu0 %v1698_v42  ;;  %v1739_v42 = vld [vmem:[#allocation7 + $0x278] ss:$12 sps:$4 sm:$0xff]  }
  0x7e   :  { %940 = vmatpush1.bf16.msra.mxu0 %v1696_v43  ;;  %v1736_v43 = vld [vmem:[#allocation7 + $0x1b0] ss:$12 sps:$4 sm:$0xff]  }
  0x7f   :  { %941 = vmatprep.subr.bf16.mxu0 %v1703_v44  ;;  %v1740_v44 = vld [vmem:[#allocation7 + $0x1b8] ss:$12 sps:$4 sm:$0xff]  }
  0x82   :  { %942 = vmatpush1.bf16.msra.mxu0 %v1701_v45  ;;  %v1743_v45 = vld [vmem:[#allocation7 + $0x1cc] ss:$12 sps:$4 sm:$0xff]  }
  0x83   :  { %943 = vmatprep.subr.bf16.mxu0 %v1708_v46  ;;  %v1744_v46 = vld [vmem:[#allocation7 + $0x290] ss:$12 sps:$4 sm:$0xff]  }
  0x86   :  { %944 = vmatpush1.bf16.msra.mxu0 %v1706_v47  ;;  %v1741_v47 = vld [vmem:[#allocation7 + $0x1c8] ss:$12 sps:$4 sm:$0xff]  }
  0x87   :  { %945 = vmatprep.subr.bf16.mxu0 %v1713_v48  ;;  %v1745_v48 = vld [vmem:[#allocation7 + $0x1d0] ss:$12 sps:$4 sm:$0xff]  }
  0x8a   :  { %946 = vmatpush1.bf16.msra.mxu0 %v1711_v49  ;;  %v1748_v49 = vld [vmem:[#allocation7 + $0x1e4] ss:$12 sps:$4 sm:$0xff]  }
  0x8b   :  { %947 = vmatprep.subr.bf16.mxu0 %v1718_v50  ;;  %v1749_v50 = vld [vmem:[#allocation7 + $0x2a8] ss:$12 sps:$4 sm:$0xff]  }
  0x8e   :  { %948 = vmatpush1.bf16.msra.mxu0 %v1716_v52  ;;  %v1750_v52 = vld [vmem:[#allocation7 + $0x1e8] ss:$12 sps:$4 sm:$0xff]  }
  0x8f   :  { %949 = vmatprep.subr.bf16.mxu0 %v1723_v54  ;;  %v1754_v54 = vld [vmem:[#allocation7 + $0x2c0] ss:$12 sps:$4 sm:$0xff]  }
  0x92   :  { %950 = vmatpush1.bf16.msra.mxu0 %v1721_v56  ;;  %v1755_v56 = vld [vmem:[#allocation7 + $0x200] ss:$12 sps:$4 sm:$0xff]  }
  0x93   :  { %962 = vmatprep.subr.bf16.mxu0 %v1728_v58  ;;  %v1759_v58 = vld [vmem:[#allocation7 + $0x2d8] ss:$12 sps:$4 sm:$0xff]  }
 0x128   :  { %v198_v5 = vpop.f32.mrb[0].mxu0  ;;  %v241_v15 = vpop.f32.mrb[0].mxu1 }
 0x129   :  { %v199_v6 = vadd.f32 %v198_v5, %v98_v1  ;;  %v200_v7 = vpop.f32.mrb[1].mxu0  ;;  %v242_v18 = vadd.f32 %v241_v15, %v106_v8  ;;  %v243_v19 = vpop.f32.mrb[1].mxu1  ;;  %v1768_v5 = vld [vmem:[#allocation7 + $0x244] ss:$12 sps:$4 sm:$0xff]   ;;  %v1783_v15 = vld [vmem:[#allocation7 + $0x2bc] ss:$12 sps:$4 sm:$0xff]  }
 0x12a   :  { %v201_v9 = vadd.f32 %v200_v7, %v102_v3  ;;  %v202_v10 = vpop.f32.mrb[2].mxu0  ;;  %v244_v22 = vadd.f32 %v243_v19, %v110_v11  ;;  %v245_v23 = vpop.f32.mrb[2].mxu1  ;;  %v1771_v7 = vld [vmem:[#allocation7 + $0x25c] ss:$12 sps:$4 sm:$0xff]   ;;  %v1789_v19 = vld [vmem:[#allocation7 + $0x2ec] ss:$12 sps:$4 sm:$0xff]  }
 0x12b   :  { %v203_v12 = vadd.f32 %v202_v10, %v98_v1  ;;  %v204_v13 = vpop.f32.mrb[3].mxu0  ;;  %v250_v16 = vmax.f32 %v199_v6, 0.0  ;;  %v252_v25 = vmax.f32 %v242_v18, 0.0  ;;  %v246_v26 = vadd.f32 %v245_v23, %v106_v8  ;;  %v247_v27 = vpop.f32.mrb[3].mxu1  ;;  %v1764_v1 = vld [vmem:[#allocation7 + $0x2f0] ss:$12 sps:$4 sm:$0xff]  }
 0x12c   :  { %v205_v14 = vadd.f32 %v204_v13, %v102_v3  ;;  %v251_v20 = vmax.f32 %v201_v9, 0.0  ;;  %v253_v31 = vmax.f32 %v244_v22, 0.0  ;;  %v248_v32 = vadd.f32 %v247_v27, %v110_v11  ;;  %v1761_v3 = vld [vmem:[#allocation7 + $0x228] ss:$12 sps:$4 sm:$0xff]   ;;  %v1766_v6 = vld [vmem:[#allocation7 + $0x240] ss:$12 sps:$4 sm:$0xff]  }
 0x12d   :  { %v254_v17 = vmax.f32 %v203_v12, 0.0  ;;  %v256_v35 = vmax.f32 %v246_v26, 0.0  ;;  %v1769_v8 = vld [vmem:[#allocation7 + $0x258] ss:$12 sps:$4 sm:$0xff]   ;;  %v1774_v9 = vld [vmem:[#allocation7 + $0x274] ss:$12 sps:$4 sm:$0xff]  }
 0x12e   :  { %v255_v21 = vmax.f32 %v205_v14, 0.0  ;;  %v257_v36 = vmax.f32 %v248_v32, 0.0  ;;  %v1772_v10 = vld [vmem:[#allocation7 + $0x270] ss:$12 sps:$4 sm:$0xff]   ;;  %v1777_v11 = vld [vmem:[#allocation7 + $0x28c] ss:$12 sps:$4 sm:$0xff]  }
 0x12f   :  { %v258_v24 = vpack.c.bf16 %v254_v17, %v250_v16  ;;  %v2057_v37 = vpack.c.bf16 %v256_v35, %v252_v25  ;;  %v1775_v12 = vld [vmem:[#allocation7 + $0x288] ss:$12 sps:$4 sm:$0xff]   ;;  %v1780_v13 = vld [vmem:[#allocation7 + $0x2a4] ss:$12 sps:$4 sm:$0xff]   ;;  %v1778_v14 = vld [vmem:[#allocation7 + $0x2a0] ss:$12 sps:$4 sm:$0xff]  }
 0x130   :  { %v259_v28 = vpack.c.bf16 %v255_v21, %v251_v20  ;;  %v261_v40 = vpack.c.bf16 %v257_v36, %v253_v31  ;;  %v1781_v16 = vld [vmem:[#allocation7 + $0x2b8] ss:$12 sps:$4 sm:$0xff]   ;;  %v1786_v17 = vld [vmem:[#allocation7 + $0x2d4] ss:$12 sps:$4 sm:$0xff]   ;;  %v1784_v18 = vld [vmem:[#allocation7 + $0x2d0] ss:$12 sps:$4 sm:$0xff]  }
 0x131   :  { %v1787_v20 = vld [vmem:[#allocation7 + $0x2e8] ss:$12 sps:$4 sm:$0xff]   ;;  %v1790_v21 = vld [vmem:[#allocation8 + $0x40] sm:$0xff]   ;;  %v1796_v27 = vld [vmem:[#allocation8 + $0x58] sm:$0xff]  }
 0x132   :  { %951 = vmatprep.mubr.bf16.mxu0 %v259_v28  ;;  %1037 = vmatprep.mubr.bf16.mxu1 %v259_v28  ;;  %v1791_v22 = vld [vmem:[#allocation8] sm:$0xff]   ;;  %v1792_v23 = vld [vmem:[#allocation8 + $0x48] sm:$0xff]   ;;  %v1794_v25 = vld [vmem:[#allocation8 + $0x50] sm:$0xff]  }
 0x133   :  { %952 = vmatmul.mubr.bf16.vlgmr.msra.gmra.mrb[4].mxu0 %v258_v24  ;;  %1038 = vmatmul.mubr.bf16.vlgmr.msra.gmra.mrb[4].mxu1 %v258_v24  ;;  %v1793_v24 = vld [vmem:[#allocation8 + $0x8] sm:$0xff]   ;;  %v1795_v26 = vld [vmem:[#allocation8 + $0x10] sm:$0xff]   ;;  %v1797_v28 = vld [vmem:[#allocation8 + $0x18] sm:$0xff]  }
 0x134   :  { %963 = vmatpush1.bf16.msra.mxu0 %v1726_v29  ;;  %1553 = vmatpush3.bf16.msra.mxu1 %v1730_v30  ;;  %v1798_v29 = vld [vmem:[#allocation8 + $0x60] sm:$0xff]   ;;  %v1800_v31 = vld [vmem:[#allocation8 + $0x68] sm:$0xff]   ;;  %v1804_v35 = vld [vmem:[#allocation8 + $0x78] sm:$0xff]  }
 0x135   :  { %964 = vmatprep.subr.bf16.mxu0 %v1733_v33  ;;  %1554 = vmatprep.subr.bf16.mxu1 %v1734_v34  ;;  %v1799_v30 = vld [vmem:[#allocation8 + $0x20] sm:$0xff]   ;;  %v1801_v32 = vld [vmem:[#allocation8 + $0x28] sm:$0xff]   ;;  %v1802_v33 = vld [vmem:[#allocation8 + $0x70] sm:$0xff]  }
 0x136   :  { %1078 = vmatprep.mubr.bf16.mxu1 %v261_v40  ;;  %994 = vmatprep.mubr.bf16.mxu0 %v261_v40  ;;  %v1803_v34 = vld [vmem:[#allocation8 + $0x30] sm:$0xff]   ;;  %v1805_v36 = vld [vmem:[#allocation8 + $0x38] sm:$0xff]  }
 0x138   :  { %965 = vmatpush1.bf16.msra.mxu0 %v1731_v38  ;;  %1555 = vmatpush3.bf16.msra.mxu1 %v1735_v39 }
 0x139   :  { %966 = vmatprep.subr.bf16.mxu0 %v1738_v41  ;;  %1556 = vmatprep.subr.bf16.mxu1 %v1739_v42 }
 0x13c   :  { %967 = vmatpush1.bf16.msra.mxu0 %v1736_v43  ;;  %1557 = vmatpush3.bf16.msra.mxu1 %v1740_v44  ;;  %v390_v44 = vld [vmem:[%s2098_s4] sm:$0x7] }
 0x13d   :  { %968 = vmatprep.subr.bf16.mxu0 %v1743_v45  ;;  %1558 = vmatprep.subr.bf16.mxu1 %v1744_v46  ;;  %v403_v45 = vrot.slane %v390_v44, %v105_v2 }
 0x140   :  { %969 = vmatpush1.bf16.msra.mxu0 %v1741_v47  ;;  %1559 = vmatpush3.bf16.msra.mxu1 %v1745_v48 }
 0x141   :  { %970 = vmatprep.subr.bf16.mxu0 %v1748_v49  ;;  %1560 = vmatprep.subr.bf16.mxu1 %v1749_v50 }
 0x144   :  { %971 = vmatpush1.bf16.msra.mxu0 %v1746_v51  ;;  %1561 = vmatpush3.bf16.msra.mxu1 %v1750_v52 }
 0x145   :  { %972 = vmatprep.subr.bf16.mxu0 %v1753_v53  ;;  %1562 = vmatprep.subr.bf16.mxu1 %v1754_v54 }
 0x148   :  { %973 = vmatpush1.bf16.msra.mxu0 %v1751_v55  ;;  %1563 = vmatpush3.bf16.msra.mxu1 %v1755_v56 }
 0x149   :  { %974 = vmatprep.subr.bf16.mxu0 %v1758_v57  ;;  %1564 = vmatprep.subr.bf16.mxu1 %v1759_v58 }
 0x14c   :  { %975 = vmatpush1.bf16.msra.mxu0 %v1756_v59  ;;  %1565 = vmatpush3.bf16.msra.mxu1 %v1760_v60  ;;  %v395_v59 = vrot.slane %v390_v44, %v97_v62  ;;  %v399_v60 = vrot.slane %v390_v44, %v101_v0  ;;  %v1808_v62 = vld [vmem:[#allocation8 + $0x90] sm:$0xff]   ;;  %v1809_v0 = vld [vmem:[#allocation8 + $0x98] sm:$0xff]  }
 0x14d   :  { %976 = vmatprep.subr.bf16.mxu0 %v1763_v63  ;;  %1566 = vmatprep.subr.bf16.mxu1 %v1764_v1 }
 0x150   :  { %977 = vmatpush1.bf16.msra.mxu0 %v1761_v3  ;;  %1567 = vmatpush3.bf16.msra.mxu1 %v1765_v4 }
 0x151   :  { %978 = vmatprep.subr.bf16.mxu0 %v1768_v5  ;;  %1574 = vmatprep.subr.bf16.mxu1 %v1790_v21 }
 0x153   :  { %1079 = vmatmul.mubr.bf16.vlgmr.msra.gmra.mrb[8].mxu1 %v2057_v37 }
 0x154   :  { %979 = vmatpush1.bf16.msra.mxu0 %v1766_v6  ;;  %1575 = vmatpush3.bf16.msra.mxu1 %v1791_v22 }
 0x155   :  { %980 = vmatprep.subr.bf16.mxu0 %v1771_v7  ;;  %1576 = vmatprep.subr.bf16.mxu1 %v1792_v23 }
 0x158   :  { %981 = vmatpush1.bf16.msra.mxu0 %v1769_v8  ;;  %1577 = vmatpush3.bf16.msra.mxu1 %v1793_v24 }
 0x159   :  { %982 = vmatprep.subr.bf16.mxu0 %v1774_v9  ;;  %1578 = vmatprep.subr.bf16.mxu1 %v1794_v25  ;;  %v1505_v25 = vld [vmem:[%s2100_s6] ss:$0 sm:$0xff] }
 0x15c   :  { %983 = vmatpush1.bf16.msra.mxu0 %v1772_v10  ;;  %1579 = vmatpush3.bf16.msra.mxu1 %v1795_v26 }
 0x15d   :  { %984 = vmatprep.subr.bf16.mxu0 %v1777_v11  ;;  %1580 = vmatprep.subr.bf16.mxu1 %v1796_v27 }
 0x160   :  { %985 = vmatpush1.bf16.msra.mxu0 %v1775_v12  ;;  %1581 = vmatpush3.bf16.msra.mxu1 %v1797_v28 }
 0x161   :  { %986 = vmatprep.subr.bf16.mxu0 %v1780_v13  ;;  %1582 = vmatprep.subr.bf16.mxu1 %v1798_v29 }
 0x164   :  { %987 = vmatpush1.bf16.msra.mxu0 %v1778_v14  ;;  %1583 = vmatpush3.bf16.msra.mxu1 %v1799_v30  ;;  %v1806_v14 = vld [vmem:[#allocation8 + $0x80] sm:$0xff]  }
 0x165   :  { %988 = vmatprep.subr.bf16.mxu0 %v1783_v15  ;;  %1584 = vmatprep.subr.bf16.mxu1 %v1800_v31  ;;  %v1810_v15 = vld [vmem:[#allocation8 + $0xa0] sm:$0xff]  }
 0x168   :  { %989 = vmatpush1.bf16.msra.mxu0 %v1781_v16  ;;  %1585 = vmatpush3.bf16.msra.mxu1 %v1801_v32  ;;  %v1811_v16 = vld [vmem:[#allocation8 + $0xa8] sm:$0xff]  }
 0x169   :  { %990 = vmatprep.subr.bf16.mxu0 %v1786_v17  ;;  %1586 = vmatprep.subr.bf16.mxu1 %v1802_v33  ;;  %v1812_v17 = vld [vmem:[#allocation8 + $0xb0] sm:$0xff]  }
 0x16c   :  { %991 = vmatpush1.bf16.msra.mxu0 %v1784_v18  ;;  %1587 = vmatpush3.bf16.msra.mxu1 %v1803_v34  ;;  %v1813_v18 = vld [vmem:[#allocation8 + $0xb8] sm:$0xff]  }
 0x16d   :  { %992 = vmatprep.subr.bf16.mxu0 %v1789_v19  ;;  %1588 = vmatprep.subr.bf16.mxu1 %v1804_v35 }
 0x170   :  { %993 = vmatpush1.bf16.msra.mxu0 %v1787_v20  ;;  %1589 = vmatpush3.bf16.msra.mxu1 %v1805_v36 }
 0x173   :  { %995 = vmatmul.mubr.bf16.vlgmr.msra.gmra.mrb[4].mxu0 %v2057_v37  ;;  %v1943_v37 = vmov 0.0  }
 0x174   :  { %1605 = vmatprep.subr.bf16.mxu1 %v1943_v37 }
 0x206   :  { %v1546_v38 = vpop.f32.mrb[4].mxu1 }
 0x207   :  { %v1547_v39 = vpop.f32.mrb[5].mxu1 }
 0x208   :  { %v1548_v40 = vadd.f32 %v1547_v39, %v1546_v38  ;;  %v1549_v41 = vpop.f32.mrb[6].mxu1 }
 0x209   :  { %v1550_v42 = vpop.f32.mrb[7].mxu1 }
 0x20a   :  { %v1551_v43 = vadd.f32 %v1550_v42, %v1549_v41  ;;  %v1040_v48 = vadd.f32 %v1548_v40, %v403_v45 }
 0x20c   :  { %v1043_v52 = vadd.f32 %v1551_v43, %v403_v45 }
 0x226   :  { %v1568_v46 = vpop.f32.mrb[8].mxu1 }
 0x227   :  { %v1569_v47 = vpop.f32.mrb[9].mxu1 }
 0x228   :  { %v1570_v49 = vadd.f32 %v1569_v47, %v1568_v46  ;;  %v1571_v50 = vpop.f32.mrb[10].mxu1 }
 0x229   :  { %v1572_v51 = vpop.f32.mrb[11].mxu1 }
 0x22a   :  { %v1081_v53 = vadd.f32 %v1570_v49, %v1040_v48  ;;  %v1573_v54 = vadd.f32 %v1572_v51, %v1571_v50 }
 0x22c   :  { %v1084_v55 = vadd.f32 %v1573_v54, %v1043_v52  ;;  %v1089_v56 = vmax.f32 %v1081_v53, 0.0 }
 0x22e   :  { %v1092_v57 = vmax.f32 %v1084_v55, 0.0 }
 0x230   :  { %v1095_v58 = vpack.c.bf16 %v1092_v57, %v1089_v56 }
 0x246   :  { %v996_v2 = vpop.f32.mrb[4].mxu0 }
 0x247   :  { %v1625_v63 = vadd.f32 %v996_v2, %v395_v59  ;;  %v998_v1 = vpop.f32.mrb[5].mxu0 }
 0x248   :  { %v1626_v3 = vadd.f32 %v998_v1, %v399_v60  ;;  %v1000_v4 = vpop.f32.mrb[6].mxu0 }
 0x249   :  { %v1627_v5 = vadd.f32 %v1000_v4, %v395_v59  ;;  %v1002_v6 = vpop.f32.mrb[7].mxu0  ;;  %v1087_v8 = vmax.f32 %v1625_v63, 0.0 }
 0x24a   :  { %v1628_v7 = vadd.f32 %v1002_v6, %v399_v60  ;;  %v1088_v10 = vmax.f32 %v1626_v3, 0.0 }
 0x24b   :  { %v1090_v9 = vmax.f32 %v1627_v5, 0.0 }
 0x24c   :  { %v1091_v11 = vmax.f32 %v1628_v7, 0.0 }
 0x24d   :  { %v1093_v12 = vpack.c.bf16 %v1090_v9, %v1087_v8 }
 0x24e   :  { %v1094_v13 = vpack.c.bf16 %v1091_v11, %v1088_v10 }
 0x250   :  { %1327 = vmatprep.mubr.bf16.mxu1 %v1094_v13 }
 0x251   :  { %1328 = vmatmul.mubr.bf16.vlgmr.msra.gmra.mrb[12].mxu1 %v1093_v12 }
 0x252   :  { %1606 = vmatpush3.bf16.msra.mxu1 %v1806_v14  ;;  %1621 = vmatprep.mubr.msk.bf16.mxu1 %vm1944_vm1, %v1943_v37 }
 0x253   :  { %1607 = vmatprep.subr.bf16.mxu1 %v1943_v37 }
 0x256   :  { %1608 = vmatpush3.bf16.msra.mxu1 %v1807_v61 }
 0x257   :  { %1609 = vmatprep.subr.bf16.mxu1 %v1943_v37 }
 0x25a   :  { %1610 = vmatpush3.bf16.msra.mxu1 %v1808_v62 }
 0x25b   :  { %1611 = vmatprep.subr.bf16.mxu1 %v1943_v37 }
 0x25e   :  { %1612 = vmatpush3.bf16.msra.mxu1 %v1809_v0 }
 0x25f   :  { %1613 = vmatprep.subr.bf16.mxu1 %v1943_v37 }
 0x262   :  { %1614 = vmatpush3.bf16.msra.mxu1 %v1810_v15 }
 0x263   :  { %1615 = vmatprep.subr.bf16.mxu1 %v1943_v37 }
 0x266   :  { %1616 = vmatpush3.bf16.msra.mxu1 %v1811_v16 }
 0x267   :  { %1617 = vmatprep.subr.bf16.mxu1 %v1943_v37 }
 0x26a   :  { %1618 = vmatpush3.bf16.msra.mxu1 %v1812_v17 }
 0x26b   :  { %1619 = vmatprep.subr.bf16.mxu1 %v1943_v37 }
 0x26e   :  { %1620 = vmatpush3.bf16.msra.mxu1 %v1813_v18 }
 0x271   :  { %1622 = vmatmul.mubr.bf16.vlgmr.msra.gmra.mrb[16].mxu1 %v1095_v58 }
 0x324   :  { %v1590_v19 = vpop.f32.mrb[12].mxu1 }
 0x325   :  { %v1591_v20 = vpop.f32.mrb[13].mxu1 }
 0x326   :  { %v1592_v21 = vadd.f32 %v1591_v20, %v1590_v19  ;;  %v1593_v22 = vpop.f32.mrb[14].mxu1 }
 0x327   :  { %v1594_v23 = vpop.f32.mrb[15].mxu1 }
 0x328   :  { %v1595_v24 = vadd.f32 %v1594_v23, %v1593_v22  ;;  %v1330_v26 = vadd.f32 %v1592_v21, %v1505_v25 }
 0x32a   :  { %v1333_v30 = vadd.f32 %v1595_v24, %v1505_v25 }
 0x344   :  { %v1370_v27 = vpop.f32.mrb[16].mxu1 }
 0x345   :  { %v1371_v28 = vadd.f32 %v1370_v27, %v1330_v26  ;;  %v1623_v29 = vpop.f32.mrb[17].mxu1 }
 0x346   :  { %v1373_v31 = vpop.f32.mrb[18].mxu1 }
 0x347   :  { %1377 = vst [vmem:[#allocation10] sm:$0xff] %v1371_v28  ;;  %v1374_v32 = vadd.f32 %v1373_v31, %v1333_v30  ;;  %v1624_v33 = vpop.f32.mrb[19].mxu1 }
 0x349   :  { %1378 = vst [vmem:[#allocation10 + $0x8] sm:$0xff] %v1374_v32 }
 0x34a   :  { %1913 = shalt.err (!%p1910_p8)
}
 0x34b   :  { %s1914_s12 = scalar_lea.hbm %s2101_s7, 256 }
 0x34c   :  { %p1915_p9 = scmp.ne.s32.totalorder %s2101_s7, %s1914_s12  ;;  %p1918_p10 = scmp.lt.u32.totalorder %s1914_s12, %s2101_s7 }
 0x34e   :  { %p1920_p11 = pnand %p1918_p10, %p1915_p9 }
 0x350   :  { %1923 = shalt.err (!%p1920_p11)
}
 0x351   :  { %s1946_s16 = smov 128   ;;  %s1947_s17 = smov 8  }
 0x352   :  { %1390 = dma.vmem_to_hbm [thread:$0]  %s1385_s9, 256, %s2101_s7, [#allocation4], %s1946_s16, %s1946_s16, %s1947_s17  }
 0x353   :  { %1930 = dma.done.wait [#allocation4], 256  }
 0x354   :  { %1931 = vsyncadd [#allocation4], 4294967040 }
 0x355   :  { %1394 = vsyncpa [#allocation3], 1 }
 0x356   :  { %1395 = vsyncpa [#allocation6], 1 }
 0x357   :  { %1396 = vsyncpa [#allocation9], 1 }
 0x358   :  { %1397 = vsyncpa [#allocation4], 1 }

</bundles_post_ra>
